<compile_context>
chip_gen: v6e
topology: v6e:2x2x1
jax: 0.10.0
libtpu: 0.0.40
codegen_flags: <defaults>
</compile_context>

<pallas_src>
import jax
import jax.numpy as jnp
from jax import lax
from jax.experimental import pallas as pl
from jax.experimental.pallas import tpu as pltpu

IN_DIM = 5


def _round_up(n, m):
    return ((n + m - 1) // m) * m


def _value_net_kernel(x_ref, w1_ref, b1_ref, w2_ref, b2_ref, o_ref):
    # x_ref : [TB, 5]   batch tile, native batch-major layout (no wrapper copy)
    # w1_ref: [H, 5]    (PyTorch layout [out_features, in_features])
    # b1_ref: [H, 1]
    # w2_ref: [H, 1]    second-layer weights as a column
    # b2_ref: [1, 1]    SMEM scalar
    # o_ref : [1, TB]   lane-dense output tile (unmasked vst)
    #
    # Layer 1: h^T = relu(W1 . x^T + b1), computed WITHOUT materializing x^T by
    # contracting dim-1 of both operands (MXU transposed-RHS path).
    h = lax.dot_general(
        w1_ref[...], x_ref[...],
        dimension_numbers=(((1,), (1,)), ((), ())),
        preferred_element_type=jnp.float32,
    ) + b1_ref[...]                                     # [H, TB]
    h = jnp.maximum(h, 0.0)
    # Layer 2 on VPU/XLU: o = sum_j w2[j] * h[j, :] + b2  -> [1, TB]
    o = jnp.sum(h * w2_ref[...], axis=0, keepdims=True) + b2_ref[0, 0]
    o_ref[...] = o.astype(o_ref.dtype)                  # lane-dense store


def value_net_forward(x, w1, b1, w2, b2, tile_b=8192):
    """x: [B, 5] f32. w1: [H, 5], b1: [H], w2: [1, H], b2: [1]. Returns [B, 1] f32."""
    B, in_dim = x.shape
    H = w1.shape[0]

    # Batch tile: multiple of 128 so the (1, TB) output block is lane-dense and
    # the (TB, 5) input block is sublane-aligned. Capped at ~half the batch so
    # the parallel grid keeps >= 2 steps (v7x has 2 TensorCores); floor of 128.
    half = _round_up(max(pl.cdiv(B, 2), 1), 128)
    TB = max(128, min(_round_up(tile_b, 128), half))

    grid = (pl.cdiv(B, TB),)  # ragged last block handled by clamped boundary DMAs

    b1_col = b1.reshape(H, 1)
    w2_col = w2.reshape(H, 1)
    b2_2d = b2.reshape(1, 1)

    weight_bytes = 4 * (w1.size + b1.size + w2.size + b2.size)
    cost = pl.CostEstimate(
        flops=2 * B * (H * in_dim + H),
        transcendentals=0,
        bytes_accessed=B * (in_dim + 1) * 4 + weight_bytes,
    )

    out = pl.pallas_call(
        _value_net_kernel,
        out_shape=jax.ShapeDtypeStruct((1, B), jnp.float32),
        grid=grid,
        in_specs=[
            pl.BlockSpec((TB, in_dim), lambda i: (i, 0)),       # x: tiled over batch
            pl.BlockSpec((H, in_dim), lambda i: (0, 0)),        # W1: VMEM-resident
            pl.BlockSpec((H, 1), lambda i: (0, 0)),             # b1: VMEM-resident
            pl.BlockSpec((H, 1), lambda i: (0, 0)),             # W2 col: VMEM-resident
            pl.BlockSpec(memory_space=pltpu.MemorySpace.SMEM),  # b2: SMEM scalar
        ],
        out_specs=pl.BlockSpec((1, TB), lambda i: (0, i)),
        compiler_params=pltpu.CompilerParams(
            dimension_semantics=("parallel",),
        ),
        cost_estimate=cost,
    )(x, w1, b1_col, w2_col, b2_2d)

    # (1, B) -> (B, 1) is the same memory order (free).
    return out.reshape(B, 1)


def init_value_net_params(key, hidden_dim=4, in_dim=IN_DIM):
    """Deterministic init mimicking PyTorch's default nn.Linear init
    (uniform in +/- 1/sqrt(fan_in)), stored in PyTorch layout [out, in]."""
    k1, k2, k3, k4 = jax.random.split(key, 4)
    lim1 = 1.0 / jnp.sqrt(jnp.float32(in_dim))
    lim2 = 1.0 / jnp.sqrt(jnp.float32(hidden_dim))
    w1 = jax.random.uniform(k1, (hidden_dim, in_dim), jnp.float32, -lim1, lim1)
    b1 = jax.random.uniform(k2, (hidden_dim,), jnp.float32, -lim1, lim1)
    w2 = jax.random.uniform(k3, (1, hidden_dim), jnp.float32, -lim2, lim2)
    b2 = jax.random.uniform(k4, (1,), jnp.float32, -lim2, lim2)
    return w1, b1, w2, b2


def value_net_reference(x, w1, b1, w2, b2):
    h = jnp.maximum(x @ w1.T + b1, 0.0)
    return h @ w2.T + b2


if __name__ == "__main__":
    key = jax.random.PRNGKey(0)
    k_params, k_x1, k_x2 = jax.random.split(key, 3)

    hidden_dim = 4
    w1, b1, w2, b2 = init_value_net_params(k_params, hidden_dim=hidden_dim)

    # Small nominal batch (B=8): single ragged block, clamped boundary DMAs.
    x_small = jax.random.normal(k_x1, (8, IN_DIM), jnp.float32)
    out_small = jax.block_until_ready(value_net_forward(x_small, w1, b1, w2, b2))
    ref_small = value_net_reference(x_small, w1, b1, w2, b2)
    assert out_small.shape == (8, 1)
    assert jnp.allclose(out_small, ref_small, atol=1e-5, rtol=1e-5)

    # Batch not a multiple of the tile: multi-step grid + ragged tail, no padding.
    x_big = jax.random.normal(k_x2, (300, IN_DIM), jnp.float32)
    out_big = jax.block_until_ready(
        value_net_forward(x_big, w1, b1, w2, b2, tile_b=128))
    ref_big = value_net_reference(x_big, w1, b1, w2, b2)
    assert out_big.shape == (300, 1)
    assert jnp.allclose(out_big, ref_big, atol=1e-5, rtol=1e-5)

    # Default (large) tile path: TB is capped at ~B/2 so the grid has 2 steps.
    out_def = jax.block_until_ready(value_net_forward(x_big, w1, b1, w2, b2))
    assert jnp.allclose(out_def, ref_big, atol=1e-5, rtol=1e-5)

    print("KERNEL_OK")
</pallas_src>

<mosaic_0001>
module attributes {stable_mosaic.version = 11 : i64} {
  func.func @_value_net_kernel(%arg0: i32, %arg1: memref<128x5xf32, #tpu.memory_space<vmem>>, %arg2: memref<4x5xf32, #tpu.memory_space<vmem>>, %arg3: memref<4x1xf32, #tpu.memory_space<vmem>>, %arg4: memref<4x1xf32, #tpu.memory_space<vmem>>, %arg5: memref<1x1xf32, #tpu.memory_space<smem>>, %arg6: memref<1x128xf32, #tpu.memory_space<vmem>>) attributes {dimension_semantics = [#tpu.dimension_semantics<parallel>], iteration_bounds = array<i64: 1>, scalar_prefetch = 0 : i64, scratch_operands = 0 : i64, tpu.core_type = #tpu.core_type<tc>, window_params = [{transform_indices = @transform_0, window_bounds = array<i64: 128, 5>}, {pipeline_mode = #tpu.pipeline_mode<synchronous>, transform_indices = @transform_1, window_bounds = array<i64: 4, 5>}, {pipeline_mode = #tpu.pipeline_mode<synchronous>, transform_indices = @transform_2, window_bounds = array<i64: 4, 1>}, {pipeline_mode = #tpu.pipeline_mode<synchronous>, transform_indices = @transform_3, window_bounds = array<i64: 4, 1>}, {transform_indices = @transform_4, window_bounds = array<i64: 1, 1>}, {transform_indices = @transform_5, window_bounds = array<i64: 1, 128>}]} {
    %c0 = arith.constant 0 : index
    %c0_0 = arith.constant 0 : index
    %0 = vector.load %arg2[%c0, %c0_0] : memref<4x5xf32, #tpu.memory_space<vmem>>, vector<4x5xf32>
    %c0_1 = arith.constant 0 : index
    %c0_2 = arith.constant 0 : index
    %1 = vector.load %arg1[%c0_1, %c0_2] : memref<128x5xf32, #tpu.memory_space<vmem>>, vector<128x5xf32>
    %cst = arith.constant dense<0.000000e+00> : vector<4x128xf32>
    %2 = tpu.matmul %0, %1, %cst {dimension_numbers = #tpu.dot_dimension_numbers<[1], [1], [0], [0], [0, 0, 1, 0], [], []>} : vector<4x5xf32>, vector<128x5xf32>, vector<4x128xf32> -> vector<4x128xf32>
    %c0_3 = arith.constant 0 : index
    %c0_4 = arith.constant 0 : index
    %3 = vector.load %arg3[%c0_3, %c0_4] : memref<4x1xf32, #tpu.memory_space<vmem>>, vector<4x1xf32>
    %4 = vector.broadcast %3 : vector<4x1xf32> to vector<4x128xf32>
    %5 = arith.addf %2, %4 : vector<4x128xf32>
    %cst_5 = arith.constant 0.000000e+00 : f32
    %6 = vector.broadcast %cst_5 : f32 to vector<4x128xf32>
    %7 = arith.maximumf %5, %6 : vector<4x128xf32>
    %c0_6 = arith.constant 0 : index
    %c0_7 = arith.constant 0 : index
    %8 = vector.load %arg4[%c0_6, %c0_7] : memref<4x1xf32, #tpu.memory_space<vmem>>, vector<4x1xf32>
    %9 = vector.broadcast %8 : vector<4x1xf32> to vector<4x128xf32>
    %10 = arith.mulf %7, %9 : vector<4x128xf32>
    %cst_8 = arith.constant dense<0.000000e+00> : vector<128xf32>
    %11 = vector.multi_reduction <add>, %10, %cst_8 [0] : vector<4x128xf32> to vector<128xf32>
    %12 = vector.shape_cast %11 : vector<128xf32> to vector<1x128xf32>
    %c0_9 = arith.constant 0 : index
    %c0_10 = arith.constant 0 : index
    %13 = memref.load %arg5[%c0_9, %c0_10] : memref<1x1xf32, #tpu.memory_space<smem>>
    %14 = vector.broadcast %13 : f32 to vector<1x128xf32>
    %15 = arith.addf %12, %14 : vector<1x128xf32>
    %c0_11 = arith.constant 0 : index
    %c0_12 = arith.constant 0 : index
    %16 = vector.load %arg6[%c0_11, %c0_12] : memref<1x128xf32, #tpu.memory_space<vmem>>, vector<1x128xf32>
    tpu.vector_store %arg6[%c0_11, %c0_12], %15 {strides = array<i32>} : memref<1x128xf32, #tpu.memory_space<vmem>>, vector<1x128xf32>,
    return
  }
  func.func @transform_0(%arg0: i32) -> (i32, i32) {
    %c0_i32 = arith.constant 0 : i32
    %c0_i32_0 = arith.constant 0 : i32
    return %arg0, %c0_i32 : i32, i32
  }
  func.func @transform_1(%arg0: i32) -> (i32, i32) {
    %c0_i32 = arith.constant 0 : i32
    %c0_i32_0 = arith.constant 0 : i32
    %c0_i32_1 = arith.constant 0 : i32
    return %c0_i32, %c0_i32_0 : i32, i32
  }
  func.func @transform_2(%arg0: i32) -> (i32, i32) {
    %c0_i32 = arith.constant 0 : i32
    %c0_i32_0 = arith.constant 0 : i32
    %c0_i32_1 = arith.constant 0 : i32
    return %c0_i32, %c0_i32_0 : i32, i32
  }
  func.func @transform_3(%arg0: i32) -> (i32, i32) {
    %c0_i32 = arith.constant 0 : i32
    %c0_i32_0 = arith.constant 0 : i32
    %c0_i32_1 = arith.constant 0 : i32
    return %c0_i32, %c0_i32_0 : i32, i32
  }
  func.func @transform_4(%arg0: i32) -> (i32, i32) {
    %c0_i32 = arith.constant 0 : i32
    %c0_i32_0 = arith.constant 0 : i32
    %c0_i32_1 = arith.constant 0 : i32
    return %c0_i32, %c0_i32_0 : i32, i32
  }
  func.func @transform_5(%arg0: i32) -> (i32, i32) {
    %c0_i32 = arith.constant 0 : i32
    %c0_i32_0 = arith.constant 0 : i32
    return %c0_i32, %arg0 : i32, i32
  }
}

</mosaic_0001>

<bundles_post_ra>
// kernel: tpu_custom_call.1
= control target key start
LH: loop header
LB: loop body
LE: loop exit
PB: predicated region body
PF: predicated region fallthrough
CT: control target
= control target key end

     0   :  { %vm45_vm0 = vcmask 39936   ;;  %v297_v1 = vmov 0.0   ;;  %vm298_vm1 = vmmov 0   ;;  %v299_v2 = vmov 0   ;;  %s411_s0 = inlined_call_operand.vmem [shape: f32[8,5], index: 0, kind: input, shape index: {}]   ;;  %s412_s1 = inlined_call_operand.vmem [shape: f32[4,5], index: 1, kind: input, shape index: {}]   ;;  %s413_s2 = inlined_call_operand.vmem [shape: f32[4,1], index: 2, kind: input, shape index: {}]   ;;  %s414_s3 = inlined_call_operand.vmem [shape: f32[4,1], index: 3, kind: input, shape index: {}]   ;;  %s415_s4 = inlined_call_operand.<no memory space> [shape: f32[1,1], index: 4, kind: input, shape index: {}]   ;;  %s416_s5 = inlined_call_operand.hbm [shape: f32[1,8], index: 5, kind: output, shape index: {}]  }
   0x1   :  { %v38_v0 = vld [vmem:[%s411_s0 + $0x78] sm:$0xff]  ;;  %235 = vmatprep.subr.mxu0 %v297_v1  ;;  %267 = vmatprep.mubr.msk.f32.mxu0 %vm298_vm1, %v297_v1  ;;  %v37_v3 = vld [vmem:[%s411_s0 + $0x70] sm:$0xff]  ;;  %v39_v4 = vld [vmem:[%s413_s2] sm:$0xf] }
   0x2   :  { %236 = vmatpush3.xpose.msk.msra.mxu0 %vm45_vm0, %v38_v0  ;;  %274 = vset.pattern.permute.xlu0 %v299_v2 }
   0x3   :  { %237 = vmatprep.subr.mxu0 %v297_v1  ;;  %42 = vperm.xlu0 %274, %v39_v4  }
   0x6   :  { %238 = vmatpush3.xpose.msk.msra.mxu0 %vm45_vm0, %v37_v3 }
   0x7   :  { %11 = vsyncpa [#allocation4], 0  ;;  %239 = vmatprep.subr.mxu0 %v297_v1  ;;  %v36_v5 = vld [vmem:[%s411_s0 + $0x68] sm:$0xff]  ;;  %v168_v6 = vld [vmem:[%s414_s3] sm:$0xf]  ;;  %vm175_vm2 = vcmask 1043456   ;;  %v184_v34 = vstv %s415_s4 }
   0x8   :  { %171 = vperm.xlu0 %274, %v168_v6   ;;  %v35_v7 = vld [vmem:[%s411_s0 + $0x60] sm:$0xff]  ;;  %v34_v8 = vld [vmem:[%s411_s0 + $0x58] sm:$0xff]  ;;  %v33_v9 = vld [vmem:[%s411_s0 + $0x50] sm:$0xff] }
   0x9   :  { %v32_v10 = vld [vmem:[%s411_s0 + $0x48] sm:$0xff]  ;;  %v31_v11 = vld [vmem:[%s411_s0 + $0x40] sm:$0xff]  ;;  %v30_v12 = vld [vmem:[%s411_s0 + $0x38] sm:$0xff] }
   0xa   :  { %240 = vmatpush3.xpose.msk.msra.mxu0 %vm45_vm0, %v36_v5  ;;  %v29_v13 = vld [vmem:[%s411_s0 + $0x30] sm:$0xff]  ;;  %v28_v14 = vld [vmem:[%s411_s0 + $0x28] sm:$0xff]  ;;  %v27_v15 = vld [vmem:[%s411_s0 + $0x20] sm:$0xff] }
   0xb   :  { %241 = vmatprep.subr.mxu0 %v297_v1  ;;  %v26_v16 = vld [vmem:[%s411_s0 + $0x18] sm:$0xff]  ;;  %v25_v17 = vld [vmem:[%s411_s0 + $0x10] sm:$0xff]  ;;  %v24_v18 = vld [vmem:[%s411_s0 + $0x8] sm:$0xff] }
   0xc   :  { %v23_v19 = vld [vmem:[%s411_s0] sm:$0xff] }
   0xd   :  { %v22_v20 = vld [vmem:[%s412_s1] sm:$0xf]  ;;  %s300_s1 = smov [#allocation3]  }
   0xe   :  { %242 = vmatpush3.xpose.msk.msra.mxu0 %vm45_vm0, %v35_v7  ;;  %s193_s2 = sshll.u32 %s300_s1, 4  ;;  %s194_s2 = int_to_ptr.vmem [resolvable:$true] %s193_s2 }
   0xf   :  { %243 = vmatprep.subr.mxu0 %v297_v1  ;;  %s275_s30 = scalar_lea.vmem %s194_s2, 16  ;;  %s279_s6 = scalar_lea.vmem %s194_s2, 32 }
  0x10   :  { %p276_p0 = scmp.ne.s32.totalorder %s194_s2, %s275_s30  ;;  %p280_p1 = scmp.lt.s32.totalorder %s194_s2, %s194_s2 }
  0x11   :  { %p281_p2 = scmp.lt.s32.totalorder %s279_s6, %s275_s30 }
  0x12   :  { %244 = vmatpush3.xpose.msk.msra.mxu0 %vm45_vm0, %v34_v8 }
  0x13   :  { %245 = vmatprep.subr.mxu0 %v297_v1  ;;  %p282_p3 = por %p281_p2, %p280_p1 }
  0x15   :  { %p283_p4 = pnand %p282_p3, %p276_p0 }
  0x16   :  { %246 = vmatpush3.xpose.msk.msra.mxu0 %vm45_vm0, %v33_v9 }
  0x17   :  { %247 = vmatprep.subr.mxu0 %v297_v1 }
  0x1a   :  { %248 = vmatpush3.xpose.msk.msra.mxu0 %vm45_vm0, %v32_v10 }
  0x1b   :  { %249 = vmatprep.subr.mxu0 %v297_v1 }
  0x1e   :  { %250 = vmatpush3.xpose.msk.msra.mxu0 %vm45_vm0, %v31_v11 }
  0x1f   :  { %251 = vmatprep.subr.mxu0 %v297_v1 }
  0x22   :  { %252 = vmatpush3.xpose.msk.msra.mxu0 %vm45_vm0, %v30_v12 }
  0x23   :  { %253 = vmatprep.subr.mxu0 %v297_v1 }
  0x26   :  { %254 = vmatpush3.xpose.msk.msra.mxu0 %vm45_vm0, %v29_v13 }
  0x27   :  { %255 = vmatprep.subr.mxu0 %v297_v1 }
  0x2a   :  { %256 = vmatpush3.xpose.msk.msra.mxu0 %vm45_vm0, %v28_v14 }
  0x2b   :  { %257 = vmatprep.subr.mxu0 %v297_v1 }
  0x2e   :  { %258 = vmatpush3.xpose.msk.msra.mxu0 %vm45_vm0, %v27_v15 }
  0x2f   :  { %259 = vmatprep.subr.mxu0 %v297_v1 }
  0x32   :  { %260 = vmatpush3.xpose.msk.msra.mxu0 %vm45_vm0, %v26_v16 }
  0x33   :  { %261 = vmatprep.subr.mxu0 %v297_v1 }
  0x36   :  { %262 = vmatpush3.xpose.msk.msra.mxu0 %vm45_vm0, %v25_v17 }
  0x37   :  { %263 = vmatprep.subr.mxu0 %v297_v1 }
  0x3a   :  { %264 = vmatpush3.xpose.msk.msra.mxu0 %vm45_vm0, %v24_v18 }
  0x3b   :  { %265 = vmatprep.subr.mxu0 %v297_v1 }
  0x3e   :  { %266 = vmatpush3.xpose.msk.msra.mxu0 %vm45_vm0, %v23_v19 }
  0x41   :  { %268 = vmatmul.mubr.msk.f32.vlgmr.msra.gmra.mxu0 %vm45_vm0, %v22_v20 }
  0x7e   :  { %v43_v21 = vpop.permute.xlu0 %42 }
  0x83   :  { %v172_v26 = vpop.permute.xlu0 %171 }
 0x101   :  { %v163_v22 = vpop.f32.mrf.mxu0 }
 0x102   :  { %v164_v23 = vadd.f32 %v163_v22, %v43_v21 }
 0x103   :  { %v269_v24 = vpop.f32.mrf.mxu0 }
 0x104   :  { %v167_v25 = vmax.f32 %v164_v23, 0.0 }
 0x106   :  { %v174_v27 = vmul.f32 %v172_v26, %v167_v25 }
 0x108   :  { %v176_v28 = vsel %vm175_vm2, %v174_v27, 0.0 }
 0x109   :  { %v177_v29 = vrot.slane %v176_v28, 4 }
 0x10b   :  { %v178_v30 = vadd.f32 %v177_v29, %v176_v28 }
 0x10d   :  { %v179_v31 = vrot.slane %v178_v30, 2 }
 0x10f   :  { %v180_v32 = vadd.f32 %v179_v31, %v178_v30 }
 0x111   :  { %v181_v33 = vrot.slane %v180_v32, 1 }
 0x113   :  { %v182_v35 = vadd.f32 %v181_v33, %v180_v32 }
 0x115   :  { %v185_v36 = vadd.f32 %v184_v34, %v182_v35 }
 0x117   :  { %186 = vst [vmem:[#allocation3] sm:$0x1] %v185_v36 }
 0x118   :  { %286 = shalt.err (!%p283_p4)
}
 0x119   :  { %196 = dma.vmem_to_hbm [thread:$0]  %s194_s2, 16, %s416_s5, [#allocation4]  }
 0x11a   :  { %295 = dma.done.wait [#allocation4], 16  }
 0x11b   :  { %296 = vsyncadd [#allocation4], 4294967280 }
 0x11c   :  { %200 = vsyncpa [#allocation4], 1 }

</bundles_post_ra>
